<compile_context>
chip_gen: v6e
topology: v6e:2x2x1
jax: 0.10.0
libtpu: 0.0.40
codegen_flags: <defaults>
</compile_context>

<pallas_src>
import functools

import jax
import jax.numpy as jnp
from jax.experimental import pallas as pl
from jax.experimental.pallas import tpu as pltpu


def _cdiv(a, b):
    return (a + b - 1) // b


def _round_up(n, m):
    return _cdiv(n, m) * m


def _actor_kernel(x_ref, w1_ref, b1_ref, w2_ref, b2_ref, out_ref, *, max_action):
    # body: phi = relu(x @ W1 + b1).  x / W1 arrive as bf16 (MXU operands,
    # halved DMA); accumulation + all elementwise math stay f32.
    phi = jnp.dot(x_ref[...], w1_ref[...],
                  preferred_element_type=jnp.float32) + b1_ref[...]
    phi = jnp.maximum(phi, 0.0)
    # head: a = phi @ W2 + b2 ; out = max_action * tanh(a)  (tanh -> EUP slot)
    a = jnp.dot(phi.astype(jnp.bfloat16), w2_ref[...],
                preferred_element_type=jnp.float32) + b2_ref[...]
    out_ref[...] = (max_action * jnp.tanh(a)).astype(out_ref.dtype)


def _choose_batch_tile(B, block_b):
    """Divisor-aware batch tile: minimizes batch padding, caps the tile at
    block_b, and guarantees >= 2 grid steps once B >= 16 so a v7x megacore can
    shard the batch axis across both TensorCores."""
    n_tiles = max(1, _cdiv(B, block_b))
    if B >= 16:
        n_tiles = max(n_tiles, 2)
    return _round_up(_cdiv(B, n_tiles), 8)


def actor_forward_pallas(x, w1, b1, w2, b2, *, max_action, block_b=1024,
                         core_parallel=False):
    """max_action * tanh(relu(x @ w1 + b1) @ w2 + b2), fused in one Pallas kernel."""
    B, S = x.shape
    F = w1.shape[1]
    A = w2.shape[1]

    # Lane-dense output: pad action dim to a multiple of 128 (unmasked vst),
    # emitted as bf16 so the dominant HBM write stream is halved.
    A_pad = _round_up(A, 128)
    TB = _choose_batch_tile(B, block_b)
    B_pad = _round_up(B, TB)

    # x is DMA'd as bf16: halves x HBM->VMEM bytes + VMEM footprint and drops
    # the per-tile in-kernel cast.
    x_p = x.astype(jnp.bfloat16)
    if B_pad != B:
        x_p = jnp.pad(x_p, ((0, B_pad - B), (0, 0)))

    b1f = b1.astype(jnp.float32).reshape(1, F)
    b2f = b2.astype(jnp.float32).reshape(1, A)
    w2p = w2
    if A_pad != A:
        # Zero-fill padding -> tanh(0) = 0 in the padded lanes; stripped below.
        w2p = jnp.pad(w2, ((0, 0), (0, A_pad - A)))
        b2f = jnp.pad(b2f, ((0, 0), (0, A_pad - A)))

    w1b = w1.astype(jnp.bfloat16)
    w2b = w2p.astype(jnp.bfloat16)

    # v7x lever: CORE_PARALLEL actually splits the grid across the 2 TCs;
    # plain PARALLEL stays the safe portable default.
    dim_sem = (pltpu.CORE_PARALLEL,) if core_parallel else (pltpu.PARALLEL,)

    kernel = functools.partial(_actor_kernel, max_action=float(max_action))
    out = pl.pallas_call(
        kernel,
        out_shape=jax.ShapeDtypeStruct((B_pad, A_pad), jnp.bfloat16),
        grid=(B_pad // TB,),
        in_specs=[
            pl.BlockSpec((TB, S), lambda i: (i, 0)),     # x: tiled over batch
            # Weights/biases use constant index_maps -> stay resident in VMEM.
            # TODO(synk): at large S/F, mark these pipeline_mode=pl.Buffered(1)
            # to drop the useless second pipeline buffer (irrelevant at F=32).
            pl.BlockSpec((S, F), lambda i: (0, 0)),      # W1
            pl.BlockSpec((1, F), lambda i: (0, 0)),      # b1
            pl.BlockSpec((F, A_pad), lambda i: (0, 0)),  # W2
            pl.BlockSpec((1, A_pad), lambda i: (0, 0)),  # b2
        ],
        out_specs=pl.BlockSpec((TB, A_pad), lambda i: (i, 0)),
        compiler_params=pltpu.CompilerParams(
            dimension_semantics=dim_sem,
            vmem_limit_bytes=32 * 1024 * 1024,
        ),
    )(x_p, w1b, b1f, w2b, b2f)

    # Strip batch/action padding; return f32 like the PyTorch module.
    return out[:B, :A].astype(jnp.float32)


def _actor_ref_bf16(x, w1, b1, w2, b2, max_action):
    """Reference using the same bf16-MXU-operand / f32-accumulate math."""
    phi = jnp.maximum(
        jnp.dot(x.astype(jnp.bfloat16), w1.astype(jnp.bfloat16),
                preferred_element_type=jnp.float32) + b1.reshape(1, -1), 0.0)
    a = jnp.dot(phi.astype(jnp.bfloat16), w2.astype(jnp.bfloat16),
                preferred_element_type=jnp.float32) + b2.reshape(1, -1)
    return max_action * jnp.tanh(a)


def actor_forward(x, w1, b1, w2, b2, *, max_action, block_b=1024,
                  min_pallas_batch=64, force_pallas=False):
    """Dispatch: micro-batches are pure launch/pad overhead for a pallas_call,
    so route B < min_pallas_batch to XLA fusion unless forced."""
    if not force_pallas and x.shape[0] < min_pallas_batch:
        return _actor_ref_bf16(x, w1, b1, w2, b2, max_action)
    return actor_forward_pallas(x, w1, b1, w2, b2, max_action=max_action,
                                block_b=block_b)


if __name__ == "__main__":
    # Small shapes consistent with the module.
    batch = 2
    state_dim = 16       # input to the FC body
    feature_dim = 32     # body.feature_dim
    action_dim = 4
    max_action = 2.0

    key = jax.random.PRNGKey(0)
    kx, k1a, k1b, k2, kx2 = jax.random.split(key, 5)

    x = jax.random.normal(kx, (batch, state_dim), jnp.float32)
    # body Linear (stand-in for layer_init'd weights)
    w1 = jax.random.normal(k1a, (state_dim, feature_dim), jnp.float32) / jnp.sqrt(
        jnp.float32(state_dim))
    b1 = jax.random.normal(k1b, (1, feature_dim), jnp.float32) * 0.01
    # Actor fc: orthogonal-init stand-in, zero bias (matches layer_init bias=0)
    w2 = jax.random.normal(k2, (feature_dim, action_dim), jnp.float32) / jnp.sqrt(
        jnp.float32(feature_dim))
    b2 = jnp.zeros((1, action_dim), jnp.float32)

    # Force the Pallas path on the tiny batch so the kernel is exercised
    # (the dispatcher would normally route B=2 to XLA fusion).
    out = actor_forward(x, w1, b1, w2, b2, max_action=max_action,
                        force_pallas=True)
    jax.block_until_ready(out)

    ref_bf = _actor_ref_bf16(x, w1, b1, w2, b2, max_action)
    ref_f32 = max_action * jnp.tanh(jnp.maximum(x @ w1 + b1, 0.0) @ w2 + b2)

    assert out.shape == (batch, action_dim)
    # Output is bf16-quantized (lane-dense bf16 store) -> up to ~8e-3 abs err.
    assert jnp.allclose(out, ref_bf, atol=2e-2), float(jnp.max(jnp.abs(out - ref_bf)))
    assert jnp.allclose(out, ref_f32, atol=5e-2), float(jnp.max(jnp.abs(out - ref_f32)))

    # Also exercise the multi-step grid + divisor-aware batch padding path.
    big_b = 300
    xb = jax.random.normal(kx2, (big_b, state_dim), jnp.float32)
    out_b = actor_forward(xb, w1, b1, w2, b2, max_action=max_action)
    jax.block_until_ready(out_b)
    ref_b = _actor_ref_bf16(xb, w1, b1, w2, b2, max_action)
    assert out_b.shape == (big_b, action_dim)
    assert jnp.allclose(out_b, ref_b, atol=2e-2), float(jnp.max(jnp.abs(out_b - ref_b)))

    print("KERNEL_OK")
</pallas_src>

<mosaic_0001>
module attributes {stable_mosaic.version = 11 : i64} {
  func.func @_actor_kernel(%arg0: i32, %arg1: memref<8x16xbf16, #tpu.memory_space<vmem>>, %arg2: memref<16x32xbf16, #tpu.memory_space<vmem>>, %arg3: memref<1x32xf32, #tpu.memory_space<vmem>>, %arg4: memref<32x128xbf16, #tpu.memory_space<vmem>>, %arg5: memref<1x128xf32, #tpu.memory_space<vmem>>, %arg6: memref<8x128xbf16, #tpu.memory_space<vmem>>) attributes {dimension_semantics = [#tpu.dimension_semantics<parallel>], iteration_bounds = array<i64: 1>, scalar_prefetch = 0 : i64, scratch_operands = 0 : i64, tpu.core_type = #tpu.core_type<tc>, window_params = [{transform_indices = @transform_0, window_bounds = array<i64: 8, 16>}, {pipeline_mode = #tpu.pipeline_mode<synchronous>, transform_indices = @transform_1, window_bounds = array<i64: 16, 32>}, {pipeline_mode = #tpu.pipeline_mode<synchronous>, transform_indices = @transform_2, window_bounds = array<i64: 1, 32>}, {pipeline_mode = #tpu.pipeline_mode<synchronous>, transform_indices = @transform_3, window_bounds = array<i64: 32, 128>}, {pipeline_mode = #tpu.pipeline_mode<synchronous>, transform_indices = @transform_4, window_bounds = array<i64: 1, 128>}, {transform_indices = @transform_5, window_bounds = array<i64: 8, 128>}]} {
    %c0 = arith.constant 0 : index
    %c0_0 = arith.constant 0 : index
    %0 = vector.load %arg1[%c0, %c0_0] : memref<8x16xbf16, #tpu.memory_space<vmem>>, vector<8x16xbf16>
    %c0_1 = arith.constant 0 : index
    %c0_2 = arith.constant 0 : index
    %1 = vector.load %arg2[%c0_1, %c0_2] : memref<16x32xbf16, #tpu.memory_space<vmem>>, vector<16x32xbf16>
    %cst = arith.constant dense<0.000000e+00> : vector<8x32xf32>
    %2 = tpu.matmul %0, %1, %cst {dimension_numbers = #tpu.dot_dimension_numbers<[1], [0], [0], [1], [0, 0, 1, 1], [], []>} : vector<8x16xbf16>, vector<16x32xbf16>, vector<8x32xf32> -> vector<8x32xf32>
    %c0_3 = arith.constant 0 : index
    %c0_4 = arith.constant 0 : index
    %3 = vector.load %arg3[%c0_3, %c0_4] : memref<1x32xf32, #tpu.memory_space<vmem>>, vector<1x32xf32>
    %4 = vector.broadcast %3 : vector<1x32xf32> to vector<8x32xf32>
    %5 = arith.addf %2, %4 : vector<8x32xf32>
    %cst_5 = arith.constant 0.000000e+00 : f32
    %6 = vector.broadcast %cst_5 : f32 to vector<8x32xf32>
    %7 = arith.maximumf %5, %6 : vector<8x32xf32>
    %8 = arith.truncf %7 : vector<8x32xf32> to vector<8x32xbf16>
    %c0_6 = arith.constant 0 : index
    %c0_7 = arith.constant 0 : index
    %9 = vector.load %arg4[%c0_6, %c0_7] : memref<32x128xbf16, #tpu.memory_space<vmem>>, vector<32x128xbf16>
    %cst_8 = arith.constant dense<0.000000e+00> : vector<8x128xf32>
    %10 = tpu.matmul %8, %9, %cst_8 {dimension_numbers = #tpu.dot_dimension_numbers<[1], [0], [0], [1], [0, 0, 1, 1], [], []>} : vector<8x32xbf16>, vector<32x128xbf16>, vector<8x128xf32> -> vector<8x128xf32>
    %c0_9 = arith.constant 0 : index
    %c0_10 = arith.constant 0 : index
    %11 = vector.load %arg5[%c0_9, %c0_10] : memref<1x128xf32, #tpu.memory_space<vmem>>, vector<1x128xf32>
    %12 = vector.broadcast %11 : vector<1x128xf32> to vector<8x128xf32>
    %13 = arith.addf %10, %12 : vector<8x128xf32>
    %14 = math.tanh %13 : vector<8x128xf32>
    %cst_11 = arith.constant 2.000000e+00 : f32
    %15 = vector.broadcast %cst_11 : f32 to vector<8x128xf32>
    %16 = arith.mulf %15, %14 : vector<8x128xf32>
    %17 = arith.truncf %16 : vector<8x128xf32> to vector<8x128xbf16>
    %c0_12 = arith.constant 0 : index
    %c0_13 = arith.constant 0 : index
    %18 = vector.load %arg6[%c0_12, %c0_13] : memref<8x128xbf16, #tpu.memory_space<vmem>>, vector<8x128xbf16>
    tpu.vector_store %arg6[%c0_12, %c0_13], %17 {strides = array<i32>} : memref<8x128xbf16, #tpu.memory_space<vmem>>, vector<8x128xbf16>,
    return
  }
  func.func @transform_0(%arg0: i32) -> (i32, i32) {
    %c0_i32 = arith.constant 0 : i32
    %c0_i32_0 = arith.constant 0 : i32
    return %arg0, %c0_i32 : i32, i32
  }
  func.func @transform_1(%arg0: i32) -> (i32, i32) {
    %c0_i32 = arith.constant 0 : i32
    %c0_i32_0 = arith.constant 0 : i32
    %c0_i32_1 = arith.constant 0 : i32
    return %c0_i32, %c0_i32_0 : i32, i32
  }
  func.func @transform_2(%arg0: i32) -> (i32, i32) {
    %c0_i32 = arith.constant 0 : i32
    %c0_i32_0 = arith.constant 0 : i32
    %c0_i32_1 = arith.constant 0 : i32
    return %c0_i32, %c0_i32_0 : i32, i32
  }
  func.func @transform_3(%arg0: i32) -> (i32, i32) {
    %c0_i32 = arith.constant 0 : i32
    %c0_i32_0 = arith.constant 0 : i32
    %c0_i32_1 = arith.constant 0 : i32
    return %c0_i32, %c0_i32_0 : i32, i32
  }
  func.func @transform_4(%arg0: i32) -> (i32, i32) {
    %c0_i32 = arith.constant 0 : i32
    %c0_i32_0 = arith.constant 0 : i32
    %c0_i32_1 = arith.constant 0 : i32
    return %c0_i32, %c0_i32_0 : i32, i32
  }
  func.func @transform_5(%arg0: i32) -> (i32, i32) {
    %c0_i32 = arith.constant 0 : i32
    %c0_i32_0 = arith.constant 0 : i32
    return %arg0, %c0_i32 : i32, i32
  }
}

</mosaic_0001>

<bundles_post_ra>
// kernel: tpu_custom_call.1
= control target key start
LH: loop header
LB: loop body
LE: loop exit
PB: predicated region body
PF: predicated region fallthrough
CT: control target
= control target key end

     0   :  { %10 = vsyncpa [#allocation3], 0  ;;  %s391_s0 = inlined_call_operand.hbm [shape: bf16[8,16], index: 0, kind: input, shape index: {}]   ;;  %s392_s1 = inlined_call_operand.hbm [shape: bf16[16,32], index: 1, kind: input, shape index: {}]   ;;  %s393_s2 = inlined_call_operand.vmem [shape: f32[1,32], index: 2, kind: input, shape index: {}]   ;;  %s394_s3 = inlined_call_operand.hbm [shape: bf16[32,128], index: 3, kind: input, shape index: {}]   ;;  %s395_s4 = inlined_call_operand.vmem [shape: f32[1,128], index: 4, kind: input, shape index: {}]   ;;  %s396_s5 = inlined_call_operand.hbm [shape: bf16[8,128], index: 5, kind: output, shape index: {}]  }
   0x1   :  { %11 = vsyncpa [#allocation6], 0 }
   0x2   :  { %12 = vsyncpa [#allocation4], 0  ;;  %s335_s18 = smov [#allocation5]  }
   0x3   :  { %s28_s19 = sshll.u32 %s335_s18, 4  ;;  %s29_s19 = int_to_ptr.vmem [resolvable:$true] %s28_s19 }
   0x4   :  { %s257_s20 = scalar_lea.vmem %s29_s19, 128  ;;  %p262_p1 = scmp.lt.s32.totalorder %s29_s19, %s29_s19 }
   0x5   :  { %p258_p0 = scmp.ne.s32.totalorder %s29_s19, %s257_s20  ;;  %p263_p2 = scmp.lt.s32.totalorder %s257_s20, %s257_s20 }
   0x7   :  { %p264_p3 = por %p263_p2, %p262_p1 }
   0x9   :  { %p265_p4 = pnand %p264_p3, %p258_p0 }
   0xb   :  { %268 = shalt.err (!%p265_p4)
}
   0xc   :  { %s336_s21 = smov 64   ;;  %s337_s22 = smov 4  }
   0xd   :  { %34 = dma.hbm_to_vmem [thread:$0]  %s392_s1, 128, %s29_s19, [#allocation6], %s336_s21, %s336_s21, %s337_s22  }
   0xe   :  { %s338_s25 = smov [#allocation2]   ;;  %s339_s27 = smov [#allocation7]  }
   0xf   :  { %s19_s26 = sshll.u32 %s338_s25, 4  ;;  %s42_s28 = sshll.u32 %s339_s27, 4  ;;  %s20_s26 = int_to_ptr.vmem [resolvable:$true] %s19_s26  ;;  %s43_s28 = int_to_ptr.vmem [resolvable:$true] %s42_s28 }
  0x10   :  { %s277_s29 = scalar_lea.vmem %s20_s26, 64  ;;  %p282_p6 = scmp.lt.s32.totalorder %s20_s26, %s20_s26 }
  0x11   :  { %p278_p5 = scmp.ne.s32.totalorder %s20_s26, %s277_s29  ;;  %p283_p7 = scmp.lt.s32.totalorder %s277_s29, %s277_s29 }
  0x13   :  { %p284_p8 = por %p283_p7, %p282_p6 }
  0x15   :  { %p285_p9 = pnand %p284_p8, %p278_p5 }
  0x17   :  { %288 = shalt.err (!%p285_p9)
}
  0x18   :  { %22 = dma.hbm_to_vmem [thread:$0]  %s391_s0, 64, %s20_s26, [#allocation3]  }
  0x19   :  { %s297_s7 = scalar_lea.vmem %s43_s28, 256  ;;  %p302_p11 = scmp.lt.s32.totalorder %s43_s28, %s43_s28 }
  0x1a   :  { %p298_p10 = scmp.ne.s32.totalorder %s43_s28, %s297_s7  ;;  %p303_p12 = scmp.lt.s32.totalorder %s297_s7, %s297_s7 }
  0x1c   :  { %p304_p13 = por %p303_p12, %p302_p11 }
  0x1e   :  { %p305_p0 = pnand %p304_p13, %p298_p10 }
  0x20   :  { %308 = shalt.err (!%p305_p0)
}
  0x21   :  { %48 = dma.hbm_to_vmem [thread:$0]  %s394_s3, 256, %s43_s28, [#allocation6], %s336_s21, %s336_s21, %s337_s22  }
  0x22   :  { %329 = dma.done.wait [#allocation3], 64  }
  0x23   :  { %330 = vsyncadd [#allocation3], 4294967232 }
  0x24   :  { %331 = dma.done.wait [#allocation6], 384  }
  0x25   :  { %332 = vsyncadd [#allocation6], 4294966912  ;;  %v340_v0 = vmov 0.0   ;;  %vm341_vm0 = vmmov 0   ;;  %v244_v1 = vld [vmem:[#allocation5] sm:$0xff]   ;;  %vm77_vm1 = vcmask 130048  }
  0x26   :  { %222 = vmatprep.subr.bf16.mxu0 %v340_v0  ;;  %224 = vmatprep.mubr.msk.bf16.mxu0 %vm341_vm0, %v340_v0  ;;  %v61_v2 = vld [vmem:[#allocation2] sm:$0xf]  ;;  %v245_v3 = vld [vmem:[#allocation7 + $0x8] sm:$0xff]   ;;  %v246_v4 = vld [vmem:[#allocation7] sm:$0xff]   ;;  %vm146_vm2 = vcmask 261120  }
  0x27   :  { %228 = vmatprep.subr.bf16.mxu1 %v340_v0  ;;  %232 = vmatprep.mubr.msk.bf16.mxu1 %vm341_vm0, %v340_v0  ;;  %v210_v5 = vld [vmem:[%s393_s2] ss:$0 sm:$0xff]  ;;  %s342_s2 = smov [#allocation8]  }
  0x28   :  { %223 = vmatpush3.bf16.msra.mxu0 %v244_v1  ;;  %229 = vmatpush3.bf16.msra.mxu1 %v245_v3  ;;  %v213_v13 = vld [vmem:[%s395_s4] ss:$0 sm:$0xff]  ;;  %s200_s11 = sshll.u32 %s342_s2, 4  ;;  %s201_s11 = int_to_ptr.vmem [resolvable:$true] %s200_s11 }
  0x29   :  { %230 = vmatprep.subr.bf16.mxu1 %v340_v0  ;;  %s309_s12 = scalar_lea.vmem %s201_s11, 64  ;;  %p314_p2 = scmp.lt.s32.totalorder %s201_s11, %s201_s11 }
  0x2a   :  { %p310_p1 = scmp.ne.s32.totalorder %s201_s11, %s309_s12  ;;  %p315_p3 = scmp.lt.s32.totalorder %s309_s12, %s309_s12 }
  0x2b   :  { %225 = vmatmul.mubr.msk.bf16.vlgmr.msra.gmra.mxu0 %vm77_vm1, %v61_v2 }
  0x2c   :  { %231 = vmatpush3.bf16.msra.mxu1 %v246_v4  ;;  %p316_p4 = por %p315_p3, %p314_p2 }
  0x2e   :  { %p317_p5 = pnand %p316_p4, %p310_p1 }
  0xeb   :  { %v115_v6 = vpop.f32.mrf.mxu0 }
  0xec   :  { %v116_v7 = vadd.f32 %v210_v5, %v115_v6 }
  0xed   :  { %v226_v8 = vpop.f32.mrf.mxu0 }
  0xee   :  { %v121_v9 = vmax.f32 %v116_v7, 0.0 }
  0xef   :  { %v118_v10 = vpop.f32.mrf.mxu0 }
  0xf0   :  { %v122_v11 = vpack.c.bf16 %v121_v9, %v121_v9 }
  0xf1   :  { %v227_v12 = vpop.f32.mrf.mxu0 }
  0xf2   :  { %233 = vmatmul.mubr.msk.bf16.vlgmr.msra.gmra.mxu1 %vm146_vm2, %v122_v11 }
 0x1b2   :  { %v184_v14 = vpop.f32.mrf.mxu1 }
 0x1b3   :  { %v185_v15 = vadd.f32 %v213_v13, %v184_v14 }
 0x1b4   :  { %v234_v16 = vpop.f32.mrf.mxu1 }
 0x1b5   :  { %247 = vtanh.f32 %v185_v15 }
 0x1b6   :  { %v187_v17 = vpop.f32.mrf.mxu1 }
 0x1b8   :  { %v235_v18 = vpop.f32.mrf.mxu1 }
 0x1c2   :  { %v248_v19 = vpop.eup %247 }
 0x1c3   :  { %v191_v20 = vmul.f32 2.0, %v248_v19 }
 0x1c5   :  { %v192_v21 = vpack.c.bf16 %v191_v20, %v191_v20 }
 0x1c7   :  { %193 = vst [vmem:[#allocation8] sm:$0xf] %v192_v21 }
 0x1c8   :  { %320 = shalt.err (!%p317_p5)
}
 0x1c9   :  { %203 = dma.vmem_to_hbm [thread:$0]  %s201_s11, 64, %s396_s5, [#allocation4]  }
 0x1ca   :  { %333 = dma.done.wait [#allocation4], 64  }
 0x1cb   :  { %334 = vsyncadd [#allocation4], 4294967232 }
 0x1cc   :  { %207 = vsyncpa [#allocation3], 1 }
 0x1cd   :  { %208 = vsyncpa [#allocation6], 1 }
 0x1ce   :  { %209 = vsyncpa [#allocation4], 1 }

</bundles_post_ra>
